<compile_context>
chip_gen: v6e
topology: v6e:2x2x1
jax: 0.10.0
libtpu: 0.0.40
codegen_flags: <defaults>
</compile_context>

<pallas_src>
import functools

import jax
import jax.numpy as jnp
from jax.experimental import pallas as pl
from jax.experimental.pallas import tpu as pltpu


def _round_up(x, m):
    return ((x + m - 1) // m) * m


def _mlp_kernel(xT_ref, w1_ref, b1_ref, w2_ref, b2_ref, oT_ref):
    # xT_ref: (IN, TB)   w1_ref: (H, IN)   b1_ref: (H, 1)
    # w2_ref: (OUT, H)   b2_ref: (OUT, 1)  oT_ref: (OUT, TB)
    h = jnp.dot(w1_ref[...], xT_ref[...], preferred_element_type=jnp.float32)
    h = jnp.maximum(h + b1_ref[...], 0.0)          # bias broadcast along lanes; ReLU
    y = jnp.dot(w2_ref[...], h, preferred_element_type=jnp.float32)
    oT_ref[...] = (y + b2_ref[...]).astype(oT_ref.dtype)


@functools.partial(jax.jit, static_argnames=("block_b",))
def math_score_model(x, w1, b1, w2, b2, *, block_b=2048):
    """Fused forward pass of MathScoreModel.

    x : (B, IN) float32
    w1: (H, IN),  b1: (H,)    -- PyTorch nn.Linear(input_size, 8) layout
    w2: (OUT, H), b2: (OUT,)  -- PyTorch nn.Linear(8, output_size) layout
    returns (B, OUT) float32
    """
    B, IN = x.shape
    H = w1.shape[0]
    OUT = w2.shape[0]

    # Batch tile: multiple of 128 so the lane axis is dense (full-vreg loads,
    # unmasked stores); large tiles amortize the ~0.35 us/step pipeline overhead.
    TB = min(block_b, _round_up(B, 128))
    B_pad = _round_up(B, TB)

    # Feature-major layout: batch on the lane axis; pad batch up to the tile grid.
    xT = jnp.pad(x.T, ((0, 0), (0, B_pad - B)))           # (IN, B_pad)
    # Biases hoisted to 2-D column vectors once, outside the kernel body.
    b1_2d = b1.reshape(H, 1)
    b2_2d = b2.reshape(OUT, 1)

    grid = (B_pad // TB,)

    oT = pl.pallas_call(
        _mlp_kernel,
        out_shape=jax.ShapeDtypeStruct((OUT, B_pad), jnp.float32),
        grid=grid,
        in_specs=[
            pl.BlockSpec((IN, TB), lambda i: (0, i)),     # streamed batch tiles
            pl.BlockSpec((H, IN), lambda i: (0, 0)),      # VMEM-resident weights
            pl.BlockSpec((H, 1), lambda i: (0, 0)),
            pl.BlockSpec((OUT, H), lambda i: (0, 0)),
            pl.BlockSpec((OUT, 1), lambda i: (0, 0)),
        ],
        out_specs=pl.BlockSpec((OUT, TB), lambda i: (0, i)),
        compiler_params=pltpu.CompilerParams(
            # Batch tiles are independent: shard grid steps across both
            # TensorCores on v7x megacore (harmless on v5e/v6e).
            dimension_semantics=("parallel",),
        ),
    )(xT, w1, b1_2d, w2, b2_2d)

    return oT[:, :B].T                                    # back to (B, OUT)


def _reference(x, w1, b1, w2, b2):
    h = jnp.maximum(x @ w1.T + b1, 0.0)
    return h @ w2.T + b2


if __name__ == "__main__":
    # Module config: input_size=32, hidden=8 (fixed by the module), output_size=4
    INPUT_SIZE, HIDDEN, OUTPUT_SIZE = 32, 8, 4
    BATCH = 8

    key = jax.random.PRNGKey(0)
    kx, kw1, kb1, kw2, kb2 = jax.random.split(key, 5)

    x = jax.random.normal(kx, (BATCH, INPUT_SIZE), dtype=jnp.float32)
    # Deterministic synthetic parameters in PyTorch nn.Linear layout
    # (weight: (out_features, in_features), bias: (out_features,)).
    w1 = jax.random.normal(kw1, (HIDDEN, INPUT_SIZE), dtype=jnp.float32) * 0.1
    b1 = jax.random.normal(kb1, (HIDDEN,), dtype=jnp.float32) * 0.1
    w2 = jax.random.normal(kw2, (OUTPUT_SIZE, HIDDEN), dtype=jnp.float32) * 0.1
    b2 = jax.random.normal(kb2, (OUTPUT_SIZE,), dtype=jnp.float32) * 0.1

    out = jax.block_until_ready(math_score_model(x, w1, b1, w2, b2))
    ref = _reference(x, w1, b1, w2, b2)

    assert out.shape == (BATCH, OUTPUT_SIZE), out.shape
    assert jnp.allclose(out, ref, atol=1e-5, rtol=1e-5), jnp.max(jnp.abs(out - ref))

    print("KERNEL_OK")
</pallas_src>

<mosaic_0001>
module attributes {stable_mosaic.version = 11 : i64} {
  func.func @_mlp_kernel(%arg0: i32, %arg1: memref<32x128xf32, #tpu.memory_space<vmem>>, %arg2: memref<8x32xf32, #tpu.memory_space<vmem>>, %arg3: memref<8x1xf32, #tpu.memory_space<vmem>>, %arg4: memref<4x8xf32, #tpu.memory_space<vmem>>, %arg5: memref<4x1xf32, #tpu.memory_space<vmem>>, %arg6: memref<4x128xf32, #tpu.memory_space<vmem>>) attributes {dimension_semantics = [#tpu.dimension_semantics<parallel>], iteration_bounds = array<i64: 1>, scalar_prefetch = 0 : i64, scratch_operands = 0 : i64, tpu.core_type = #tpu.core_type<tc>, window_params = [{transform_indices = @transform_0, window_bounds = array<i64: 32, 128>}, {pipeline_mode = #tpu.pipeline_mode<synchronous>, transform_indices = @transform_1, window_bounds = array<i64: 8, 32>}, {pipeline_mode = #tpu.pipeline_mode<synchronous>, transform_indices = @transform_2, window_bounds = array<i64: 8, 1>}, {pipeline_mode = #tpu.pipeline_mode<synchronous>, transform_indices = @transform_3, window_bounds = array<i64: 4, 8>}, {pipeline_mode = #tpu.pipeline_mode<synchronous>, transform_indices = @transform_4, window_bounds = array<i64: 4, 1>}, {transform_indices = @transform_5, window_bounds = array<i64: 4, 128>}]} {
    %c0 = arith.constant 0 : index
    %c0_0 = arith.constant 0 : index
    %0 = vector.load %arg2[%c0, %c0_0] : memref<8x32xf32, #tpu.memory_space<vmem>>, vector<8x32xf32>
    %c0_1 = arith.constant 0 : index
    %c0_2 = arith.constant 0 : index
    %1 = vector.load %arg1[%c0_1, %c0_2] : memref<32x128xf32, #tpu.memory_space<vmem>>, vector<32x128xf32>
    %cst = arith.constant dense<0.000000e+00> : vector<8x128xf32>
    %2 = tpu.matmul %0, %1, %cst {dimension_numbers = #tpu.dot_dimension_numbers<[1], [0], [0], [1], [0, 0, 1, 1], [], []>} : vector<8x32xf32>, vector<32x128xf32>, vector<8x128xf32> -> vector<8x128xf32>
    %c0_3 = arith.constant 0 : index
    %c0_4 = arith.constant 0 : index
    %3 = vector.load %arg3[%c0_3, %c0_4] : memref<8x1xf32, #tpu.memory_space<vmem>>, vector<8x1xf32>
    %4 = vector.broadcast %3 : vector<8x1xf32> to vector<8x128xf32>
    %5 = arith.addf %2, %4 : vector<8x128xf32>
    %cst_5 = arith.constant 0.000000e+00 : f32
    %6 = vector.broadcast %cst_5 : f32 to vector<8x128xf32>
    %7 = arith.maximumf %5, %6 : vector<8x128xf32>
    %c0_6 = arith.constant 0 : index
    %c0_7 = arith.constant 0 : index
    %8 = vector.load %arg4[%c0_6, %c0_7] : memref<4x8xf32, #tpu.memory_space<vmem>>, vector<4x8xf32>
    %cst_8 = arith.constant dense<0.000000e+00> : vector<4x128xf32>
    %9 = tpu.matmul %8, %7, %cst_8 {dimension_numbers = #tpu.dot_dimension_numbers<[1], [0], [0], [1], [0, 0, 1, 1], [], []>} : vector<4x8xf32>, vector<8x128xf32>, vector<4x128xf32> -> vector<4x128xf32>
    %c0_9 = arith.constant 0 : index
    %c0_10 = arith.constant 0 : index
    %10 = vector.load %arg5[%c0_9, %c0_10] : memref<4x1xf32, #tpu.memory_space<vmem>>, vector<4x1xf32>
    %11 = vector.broadcast %10 : vector<4x1xf32> to vector<4x128xf32>
    %12 = arith.addf %9, %11 : vector<4x128xf32>
    %c0_11 = arith.constant 0 : index
    %c0_12 = arith.constant 0 : index
    %13 = vector.load %arg6[%c0_11, %c0_12] : memref<4x128xf32, #tpu.memory_space<vmem>>, vector<4x128xf32>
    tpu.vector_store %arg6[%c0_11, %c0_12], %12 {strides = array<i32>} : memref<4x128xf32, #tpu.memory_space<vmem>>, vector<4x128xf32>,
    return
  }
  func.func @transform_0(%arg0: i32) -> (i32, i32) {
    %c0_i32 = arith.constant 0 : i32
    %c0_i32_0 = arith.constant 0 : i32
    return %c0_i32, %arg0 : i32, i32
  }
  func.func @transform_1(%arg0: i32) -> (i32, i32) {
    %c0_i32 = arith.constant 0 : i32
    %c0_i32_0 = arith.constant 0 : i32
    %c0_i32_1 = arith.constant 0 : i32
    return %c0_i32, %c0_i32_0 : i32, i32
  }
  func.func @transform_2(%arg0: i32) -> (i32, i32) {
    %c0_i32 = arith.constant 0 : i32
    %c0_i32_0 = arith.constant 0 : i32
    %c0_i32_1 = arith.constant 0 : i32
    return %c0_i32, %c0_i32_0 : i32, i32
  }
  func.func @transform_3(%arg0: i32) -> (i32, i32) {
    %c0_i32 = arith.constant 0 : i32
    %c0_i32_0 = arith.constant 0 : i32
    %c0_i32_1 = arith.constant 0 : i32
    return %c0_i32, %c0_i32_0 : i32, i32
  }
  func.func @transform_4(%arg0: i32) -> (i32, i32) {
    %c0_i32 = arith.constant 0 : i32
    %c0_i32_0 = arith.constant 0 : i32
    %c0_i32_1 = arith.constant 0 : i32
    return %c0_i32, %c0_i32_0 : i32, i32
  }
  func.func @transform_5(%arg0: i32) -> (i32, i32) {
    %c0_i32 = arith.constant 0 : i32
    %c0_i32_0 = arith.constant 0 : i32
    return %c0_i32, %arg0 : i32, i32
  }
}

</mosaic_0001>

<bundles_post_ra>
// kernel: math_score_model.1
= control target key start
LH: loop header
LB: loop body
LE: loop exit
PB: predicated region body
PF: predicated region fallthrough
CT: control target
= control target key end

     0   :  { %v221_v0 = vmov 0.0   ;;  %vm222_vm0 = vmmov 0   ;;  %v223_v3 = vmov 0   ;;  %vm31_vm1 = vcmask 261120   ;;  %s283_s0 = inlined_call_operand.vmem [shape: f32[32,128], index: 0, kind: input, shape index: {}]   ;;  %s284_s2 = inlined_call_operand.vmem [shape: f32[8,1], index: 2, kind: input, shape index: {}]   ;;  %s285_s4 = inlined_call_operand.vmem [shape: f32[4,1], index: 4, kind: input, shape index: {}]   ;;  %s286_s1 = inlined_call_operand.vmem [shape: f32[8,32], index: 1, kind: input, shape index: {}]   ;;  %s287_s3 = inlined_call_operand.vmem [shape: f32[4,8], index: 3, kind: input, shape index: {}]   ;;  %s288_s5 = inlined_call_operand.vmem [shape: f32[4,128], index: 5, kind: output, shape index: {}]  }
   0x1   :  { %201 = vmatprep.subr.mxu0 %v221_v0  ;;  %v24_v1 = vld [vmem:[%s283_s0 + $0x18] sm:$0xff]  ;;  %v23_v2 = vld [vmem:[%s283_s0 + $0x10] sm:$0xff]  ;;  %209 = vmatprep.mubr.msk.f32.mxu0 %vm222_vm0, %v221_v0  ;;  %v25_v4 = vld [vmem:[%s284_s2] sm:$0xff]  ;;  %vm113_vm2 = vcmask 64512  }
   0x2   :  { %202 = vmatpush3.msra.mxu0 %v24_v1  ;;  %220 = vset.pattern.permute.xlu0 %v223_v3  ;;  %v22_v5 = vld [vmem:[%s283_s0 + $0x8] sm:$0xff]  ;;  %v107_v6 = vld [vmem:[%s285_s4] sm:$0xf] }
   0x3   :  { %203 = vmatprep.subr.mxu0 %v221_v0  ;;  %28 = vperm.xlu0 %220, %v25_v4   ;;  %v21_v7 = vld [vmem:[%s283_s0] sm:$0xff] }
   0x4   :  { %204 = vmatpush3.msra.mxu0 %v23_v2  ;;  %212 = vmatprep.subr.mxu1 %v221_v0  ;;  %v20_v8 = vld [vmem:[%s286_s1] sm:$0xff] }
   0x5   :  { %205 = vmatprep.subr.mxu0 %v221_v0  ;;  %214 = vmatprep.mubr.msk.f32.mxu1 %vm222_vm0, %v221_v0  ;;  %v106_v14 = vld [vmem:[%s287_s3] sm:$0xf] }
   0x6   :  { %206 = vmatpush3.msra.mxu0 %v22_v5 }
   0x7   :  { %207 = vmatprep.subr.mxu0 %v221_v0  ;;  %110 = vperm.xlu0 %220, %v107_v6  }
   0x8   :  { %208 = vmatpush3.msra.mxu0 %v21_v7 }
   0x9   :  { %210 = vmatmul.mubr.msk.f32.vlgmr.msra.gmra.mxu0 %vm31_vm1, %v20_v8 }
  0x7e   :  { %v29_v9 = vpop.permute.xlu0 %28 }
  0x82   :  { %v111_v15 = vpop.permute.xlu0 %110 }
  0xc9   :  { %v101_v10 = vpop.f32.mrf.mxu0 }
  0xca   :  { %v102_v11 = vadd.f32 %v101_v10, %v29_v9 }
  0xcb   :  { %v211_v12 = vpop.f32.mrf.mxu0 }
  0xcc   :  { %v105_v13 = vmax.f32 %v102_v11, 0.0 }
  0xce   :  { %213 = vmatpush3.msra.mxu1 %v105_v13 }
  0xcf   :  { %215 = vmatmul.mubr.msk.f32.vlgmr.msra.gmra.mxu1 %vm113_vm2, %v106_v14 }
 0x18f   :  { %v183_v16 = vpop.f32.mrf.mxu1 }
 0x190   :  { %v184_v17 = vadd.f32 %v183_v16, %v111_v15 }
 0x191   :  { %v216_v18 = vpop.f32.mrf.mxu1 }
 0x192   :  { %187 = vst [vmem:[%s288_s5] sm:$0xf] %v184_v17 }

</bundles_post_ra>
